<compile_context>
chip_gen: v5e
topology: v5e:2x2
jax: 0.10.0
libtpu: 0.0.40
codegen_flags: <defaults>
</compile_context>

<pallas_src>
from functools import partial

import jax
import jax.numpy as jnp
from jax.experimental import pallas as pl
from jax.experimental.pallas import tpu as pltpu


def fused_heads_kernel(cls_ref, fcw_ref, fcb_ref, clsw_ref, clsb_ref, out_ref):
    # cls_ref : [B, H]            f32   CLS token (pre-sliced in wrapper)
    # fcw_ref : [H, NH*H]         bf16  stacked fc_i weights (cols i*H:(i+1)*H = head i)
    # fcb_ref : [1, NH*H]         f32   stacked fc_i biases
    # clsw_ref: [NH*H, OUT_LANES] f32   block-diagonal cls weights
    # clsb_ref: [1, OUT_LANES]    f32   cls biases in first NH*NC lanes, zeros elsewhere
    # out_ref : [B, OUT_LANES]    f32   lane-dense padded logits
    x = cls_ref[...].astype(jnp.bfloat16)                               # bf16 MXU operand only

    # One wide matmul for all heads' fc layers (f32 accumulation).
    h = jnp.dot(x, fcw_ref[...], preferred_element_type=jnp.float32)    # [B, NH*H] f32
    h = jnp.tanh(h + fcb_ref[...])                                      # f32 bias + tanh (v5e-safe)
    # TODO(synk): dropout_i is stochastic in training-mode forward; identity here
    # (eval-mode semantics). Would need pltpu.prng_seed + prng_random_bits.

    # All cls_i projections as one block-diagonal matmul on the idle MXU.
    # h stays f32 to preserve tanh-output precision; single unmasked [B, 128] store.
    out_ref[...] = (jnp.dot(h, clsw_ref[...], preferred_element_type=jnp.float32)
                    + clsb_ref[...])


@partial(jax.jit, static_argnames=("out_lanes",))
def maml_unicorn_heads(sequence_output, fc_w, fc_b, cls_w, cls_b, *, out_lanes=128):
    """sequence_output: [B, S, H]; fc_w: [NH, H, H] ([in, out] per head);
       fc_b: [NH, H]; cls_w: [NH, H, NC]; cls_b: [NH, NC] -> logits [NH, B, NC]."""
    NH, H, NC = cls_w.shape
    B, S, _ = sequence_output.shape
    n_out = NH * NC
    assert n_out <= out_lanes

    # CLS token sliced outside the kernel: B*H*4 bytes instead of B*S*H*4.
    cls_tok = sequence_output[:, 0, :]                                       # [B, H] f32

    # Host-side packing (all under the same jit — fused layout plumbing, not compute):
    fcw_stacked = jnp.transpose(fc_w, (1, 0, 2)).reshape(H, NH * H)          # [H, NH*H]
    fcw_stacked = fcw_stacked.astype(jnp.bfloat16)                           # halve HBM weight bytes
    fcb_stacked = fc_b.reshape(1, NH * H).astype(jnp.float32)                # [1, NH*H]

    # Block-diagonal cls weights: rows i*H:(i+1)*H, cols i*NC:(i+1)*NC hold cls_w[i].
    eye = jnp.eye(NH, dtype=jnp.float32)
    clsw_bd = jnp.einsum("nhc,nm->nhmc", cls_w.astype(jnp.float32), eye)
    clsw_bd = clsw_bd.reshape(NH * H, n_out)
    clsw_bd = jnp.pad(clsw_bd, ((0, 0), (0, out_lanes - n_out)))             # [NH*H, OUT_LANES]
    clsb_pad = jnp.pad(cls_b.reshape(1, n_out).astype(jnp.float32),
                       ((0, 0), (0, out_lanes - n_out)))                     # [1, OUT_LANES]

    flops = 2 * B * H * (NH * H) + 2 * B * (NH * H) * out_lanes
    bytes_accessed = (cls_tok.size * 4 + fcw_stacked.size * 2
                      + fcb_stacked.size * 4 + clsw_bd.size * 4
                      + clsb_pad.size * 4 + B * out_lanes * 4)

    out_padded = pl.pallas_call(
        fused_heads_kernel,
        out_shape=jax.ShapeDtypeStruct((B, out_lanes), jnp.float32),
        grid=(1,),  # single grid step: weights (~160 KiB) trivially fit VMEM
        in_specs=[
            pl.BlockSpec((B, H), lambda i: (0, 0)),               # CLS token
            pl.BlockSpec((H, NH * H), lambda i: (0, 0)),          # stacked fc weights (bf16)
            pl.BlockSpec((1, NH * H), lambda i: (0, 0)),          # stacked fc biases
            pl.BlockSpec((NH * H, out_lanes), lambda i: (0, 0)),  # block-diag cls weights
            pl.BlockSpec((1, out_lanes), lambda i: (0, 0)),       # padded cls biases
        ],
        out_specs=pl.BlockSpec((B, out_lanes), lambda i: (0, 0)),
        compiler_params=pltpu.CompilerParams(
            dimension_semantics=("arbitrary",)),                  # don't shard trivial work across TCs
        cost_estimate=pl.CostEstimate(flops=flops,
                                      transcendentals=B * NH * H,
                                      bytes_accessed=bytes_accessed),
    )(cls_tok, fcw_stacked, fcb_stacked, clsw_bd, clsb_pad)

    # Strip lane padding; present as [NH, B, NC] (the module returns a list of [B, NC]).
    logits = out_padded[:, :n_out].reshape(B, NH, NC)
    return jnp.transpose(logits, (1, 0, 2))


def reference_heads(sequence_output, fc_w, fc_b, cls_w, cls_b):
    """Pure-JAX reference using the same bf16 fc operands as the kernel."""
    x = sequence_output[:, 0, :]
    xb = x.astype(jnp.bfloat16).astype(jnp.float32)
    wb = fc_w.astype(jnp.bfloat16).astype(jnp.float32)
    h = jnp.tanh(jnp.einsum("bh,nhk->nbk", xb, wb) + fc_b[:, None, :])
    return jnp.einsum("nbk,nkc->nbc", h, cls_w) + cls_b[:, None, :]


if __name__ == "__main__":
    B, S, H = 8, 16, 128          # batch, seq_len, encoder hidden_size
    NUM_CLASSIFIER = 2            # args.num_classifier
    NC = 1                        # base __init__: cls_i = nn.Linear(H, 1)

    key = jax.random.PRNGKey(0)
    k_seq, k_fw, k_fb, k_cw, k_cb = jax.random.split(key, 5)

    # Synthetic encoder output (stand-in for RobertaModel/BertModel sequence_output).
    sequence_output = jax.random.normal(k_seq, (B, S, H), dtype=jnp.float32)

    # Deterministic head parameters; fc_w stored as [in, out] per head so y = x @ fc_w[i] + fc_b[i].
    fc_w = jax.random.normal(k_fw, (NUM_CLASSIFIER, H, H), dtype=jnp.float32) * 0.02
    fc_b = jax.random.normal(k_fb, (NUM_CLASSIFIER, H), dtype=jnp.float32) * 0.02
    cls_w = jax.random.normal(k_cw, (NUM_CLASSIFIER, H, NC), dtype=jnp.float32) * 0.02
    cls_b = jax.random.normal(k_cb, (NUM_CLASSIFIER, NC), dtype=jnp.float32) * 0.02

    logits = maml_unicorn_heads(sequence_output, fc_w, fc_b, cls_w, cls_b)
    logits = jax.block_until_ready(logits)

    ref = reference_heads(sequence_output, fc_w, fc_b, cls_w, cls_b)
    assert logits.shape == (NUM_CLASSIFIER, B, NC)
    assert jnp.allclose(logits, ref, atol=1e-4, rtol=1e-4), (
        float(jnp.max(jnp.abs(logits - ref))))

    print("KERNEL_OK")
</pallas_src>

<mosaic_0001>
module attributes {stable_mosaic.version = 11 : i64} {
  func.func @fused_heads_kernel(%arg0: i32, %arg1: memref<8x128xf32, #tpu.memory_space<vmem>>, %arg2: memref<128x256xbf16, #tpu.memory_space<vmem>>, %arg3: memref<1x256xf32, #tpu.memory_space<vmem>>, %arg4: memref<256x128xf32, #tpu.memory_space<vmem>>, %arg5: memref<1x128xf32, #tpu.memory_space<vmem>>, %arg6: memref<8x128xf32, #tpu.memory_space<vmem>>) attributes {dimension_semantics = [#tpu.dimension_semantics<arbitrary>], iteration_bounds = array<i64: 1>, scalar_prefetch = 0 : i64, scratch_operands = 0 : i64, tpu.core_type = #tpu.core_type<tc>, window_params = [{pipeline_mode = #tpu.pipeline_mode<synchronous>, transform_indices = @transform_0, window_bounds = array<i64: 8, 128>}, {pipeline_mode = #tpu.pipeline_mode<synchronous>, transform_indices = @transform_1, window_bounds = array<i64: 128, 256>}, {pipeline_mode = #tpu.pipeline_mode<synchronous>, transform_indices = @transform_2, window_bounds = array<i64: 1, 256>}, {pipeline_mode = #tpu.pipeline_mode<synchronous>, transform_indices = @transform_3, window_bounds = array<i64: 256, 128>}, {pipeline_mode = #tpu.pipeline_mode<synchronous>, transform_indices = @transform_4, window_bounds = array<i64: 1, 128>}, {pipeline_mode = #tpu.pipeline_mode<synchronous>, transform_indices = @transform_5, window_bounds = array<i64: 8, 128>}]} {
    %c0 = arith.constant 0 : index
    %c0_0 = arith.constant 0 : index
    %0 = vector.load %arg1[%c0, %c0_0] : memref<8x128xf32, #tpu.memory_space<vmem>>, vector<8x128xf32>
    %1 = arith.truncf %0 : vector<8x128xf32> to vector<8x128xbf16>
    %c0_1 = arith.constant 0 : index
    %c0_2 = arith.constant 0 : index
    %2 = vector.load %arg2[%c0_1, %c0_2] : memref<128x256xbf16, #tpu.memory_space<vmem>>, vector<128x256xbf16>
    %cst = arith.constant dense<0.000000e+00> : vector<8x256xf32>
    %3 = tpu.matmul %1, %2, %cst {dimension_numbers = #tpu.dot_dimension_numbers<[1], [0], [0], [1], [0, 0, 1, 1], [], []>} : vector<8x128xbf16>, vector<128x256xbf16>, vector<8x256xf32> -> vector<8x256xf32>
    %c0_3 = arith.constant 0 : index
    %c0_4 = arith.constant 0 : index
    %4 = vector.load %arg3[%c0_3, %c0_4] : memref<1x256xf32, #tpu.memory_space<vmem>>, vector<1x256xf32>
    %5 = vector.broadcast %4 : vector<1x256xf32> to vector<8x256xf32>
    %6 = arith.addf %3, %5 : vector<8x256xf32>
    %7 = math.tanh %6 : vector<8x256xf32>
    %c0_5 = arith.constant 0 : index
    %c0_6 = arith.constant 0 : index
    %8 = vector.load %arg4[%c0_5, %c0_6] : memref<256x128xf32, #tpu.memory_space<vmem>>, vector<256x128xf32>
    %cst_7 = arith.constant dense<0.000000e+00> : vector<8x128xf32>
    %9 = tpu.matmul %7, %8, %cst_7 {dimension_numbers = #tpu.dot_dimension_numbers<[1], [0], [0], [1], [0, 0, 1, 1], [], []>} : vector<8x256xf32>, vector<256x128xf32>, vector<8x128xf32> -> vector<8x128xf32>
    %c0_8 = arith.constant 0 : index
    %c0_9 = arith.constant 0 : index
    %10 = vector.load %arg5[%c0_8, %c0_9] : memref<1x128xf32, #tpu.memory_space<vmem>>, vector<1x128xf32>
    %11 = vector.broadcast %10 : vector<1x128xf32> to vector<8x128xf32>
    %12 = arith.addf %9, %11 : vector<8x128xf32>
    %c0_10 = arith.constant 0 : index
    %c0_11 = arith.constant 0 : index
    %13 = vector.load %arg6[%c0_10, %c0_11] : memref<8x128xf32, #tpu.memory_space<vmem>>, vector<8x128xf32>
    tpu.vector_store %arg6[%c0_10, %c0_11], %12 {strides = array<i32>} : memref<8x128xf32, #tpu.memory_space<vmem>>, vector<8x128xf32>,
    return
  }
  func.func @transform_0(%arg0: i32) -> (i32, i32) {
    %c0_i32 = arith.constant 0 : i32
    %c0_i32_0 = arith.constant 0 : i32
    %c0_i32_1 = arith.constant 0 : i32
    return %c0_i32, %c0_i32_0 : i32, i32
  }
  func.func @transform_1(%arg0: i32) -> (i32, i32) {
    %c0_i32 = arith.constant 0 : i32
    %c0_i32_0 = arith.constant 0 : i32
    %c0_i32_1 = arith.constant 0 : i32
    return %c0_i32, %c0_i32_0 : i32, i32
  }
  func.func @transform_2(%arg0: i32) -> (i32, i32) {
    %c0_i32 = arith.constant 0 : i32
    %c0_i32_0 = arith.constant 0 : i32
    %c0_i32_1 = arith.constant 0 : i32
    return %c0_i32, %c0_i32_0 : i32, i32
  }
  func.func @transform_3(%arg0: i32) -> (i32, i32) {
    %c0_i32 = arith.constant 0 : i32
    %c0_i32_0 = arith.constant 0 : i32
    %c0_i32_1 = arith.constant 0 : i32
    return %c0_i32, %c0_i32_0 : i32, i32
  }
  func.func @transform_4(%arg0: i32) -> (i32, i32) {
    %c0_i32 = arith.constant 0 : i32
    %c0_i32_0 = arith.constant 0 : i32
    %c0_i32_1 = arith.constant 0 : i32
    return %c0_i32, %c0_i32_0 : i32, i32
  }
  func.func @transform_5(%arg0: i32) -> (i32, i32) {
    %c0_i32 = arith.constant 0 : i32
    %c0_i32_0 = arith.constant 0 : i32
    %c0_i32_1 = arith.constant 0 : i32
    return %c0_i32, %c0_i32_0 : i32, i32
  }
}

</mosaic_0001>

<bundles_post_ra>
// kernel: maml_unicorn_heads.1
= control target key start
LH: loop header
LB: loop body
LE: loop exit
PB: predicated region body
PF: predicated region fallthrough
CT: control target
= control target key end

     0   :  { %s552_s1 = inlined_call_operand.vmem [shape: bf16[128,256], index: 1, kind: input, shape index: {}]   ;;  %s553_s3 = inlined_call_operand.vmem [shape: f32[256,128], index: 3, kind: input, shape index: {}]   ;;  %s554_s0 = inlined_call_operand.vmem [shape: f32[8,128], index: 0, kind: input, shape index: {}]   ;;  %s555_s4 = inlined_call_operand.vmem [shape: f32[1,128], index: 4, kind: input, shape index: {}]   ;;  %s556_s2 = inlined_call_operand.vmem [shape: f32[1,256], index: 2, kind: input, shape index: {}]   ;;  %s557_s5 = inlined_call_operand.vmem [shape: f32[8,128], index: 5, kind: output, shape index: {}]  }
   0x1   :  { %v291_v0 = vld [vmem:[%s552_s1 + $0x70] sm:$0xf]  ;;  %v312_v1 = vld [vmem:[%s552_s1 + $0x74] sm:$0xf0]  ;;  %v311_v2 = vld [vmem:[%s552_s1 + $0x74] sm:$0xf] }
   0x2   :  { %v292_v3 = vor.u32 %v312_v1, %v291_v0  ;;  %v293_v4 = vld [vmem:[%s552_s1 + $0x78] sm:$0xf0]  ;;  %v283_v5 = vld [vmem:[%s552_s1 + $0x60] sm:$0xf]  ;;  %v310_v6 = vld [vmem:[%s552_s1 + $0x64] sm:$0xf0] }
   0x3   :  { %v296_v7 = vor.u32 %v311_v2, %v293_v4  ;;  %v309_v8 = vld [vmem:[%s552_s1 + $0x64] sm:$0xf]  ;;  %v285_v9 = vld [vmem:[%s552_s1 + $0x68] sm:$0xf0]  ;;  %v284_v10 = vor.u32 %v310_v6, %v283_v5  ;;  %v275_v12 = vld [vmem:[%s552_s1 + $0x50] sm:$0xf] }
   0x4   :  { %124 = vmatpush.bf16.msra.mxu0 %v292_v3  ;;  %v288_v11 = vor.u32 %v309_v8, %v285_v9  ;;  %v308_v13 = vld [vmem:[%s552_s1 + $0x54] sm:$0xf0]  ;;  %v307_v14 = vld [vmem:[%s552_s1 + $0x54] sm:$0xf]  ;;  %v277_v15 = vld [vmem:[%s552_s1 + $0x58] sm:$0xf0] }
   0x5   :  { %137 = vmatpush.bf16.msra.mxu1 %v296_v7  ;;  %v276_v16 = vor.u32 %v308_v13, %v275_v12  ;;  %v280_v17 = vor.u32 %v307_v14, %v277_v15  ;;  %v267_v18 = vld [vmem:[%s552_s1 + $0x40] sm:$0xf]  ;;  %v306_v19 = vld [vmem:[%s552_s1 + $0x44] sm:$0xf0]  ;;  %v305_v20 = vld [vmem:[%s552_s1 + $0x44] sm:$0xf] }
   0x6   :  { %v269_v21 = vld [vmem:[%s552_s1 + $0x48] sm:$0xf0]  ;;  %v268_v22 = vor.u32 %v306_v19, %v267_v18  ;;  %v167_v23 = vld [vmem:[%s553_s3 + $0x78] sm:$0xff]  ;;  %v166_v24 = vld [vmem:[%s553_s3 + $0x70] sm:$0xff] }
   0x7   :  { %v183_v25 = vld [vmem:[%s553_s3 + $0xf8] sm:$0xff]  ;;  %v272_v26 = vor.u32 %v305_v20, %v269_v21  ;;  %v259_v27 = vld [vmem:[%s552_s1 + $0x30] sm:$0xf]  ;;  %188 = vmatpush.msra.mxu2 %v167_v23  ;;  %v303_v30 = vld [vmem:[%s552_s1 + $0x34] sm:$0xf] }
   0x8   :  { %125 = vmatpush.bf16.msra.mxu0 %v284_v10  ;;  %v304_v28 = vld [vmem:[%s552_s1 + $0x34] sm:$0xf0]  ;;  %v182_v29 = vld [vmem:[%s553_s3 + $0xf0] sm:$0xff]  ;;  %v261_v31 = vld [vmem:[%s552_s1 + $0x38] sm:$0xf0]  ;;  %208 = vmatpush.msra.mxu3 %v183_v25 }
   0x9   :  { %138 = vmatpush.bf16.msra.mxu1 %v288_v11  ;;  %v165_v32 = vld [vmem:[%s553_s3 + $0x68] sm:$0xff]  ;;  %189 = vmatpush.msra.mxu2 %v166_v24  ;;  %v260_v34 = vor.u32 %v304_v28, %v259_v27  ;;  %v164_v35 = vld [vmem:[%s553_s3 + $0x60] sm:$0xff]  ;;  %v264_v36 = vor.u32 %v303_v30, %v261_v31  ;;  %v163_v42 = vld [vmem:[%s553_s3 + $0x58] sm:$0xff] }
   0xa   :  { %v181_v33 = vld [vmem:[%s553_s3 + $0xe8] sm:$0xff]  ;;  %209 = vmatpush.msra.mxu3 %v182_v29  ;;  %v251_v37 = vld [vmem:[%s552_s1 + $0x20] sm:$0xf]  ;;  %v301_v40 = vld [vmem:[%s552_s1 + $0x24] sm:$0xf] }
   0xb   :  { %v302_v38 = vld [vmem:[%s552_s1 + $0x24] sm:$0xf0]  ;;  %190 = vmatpush.msra.mxu2 %v165_v32  ;;  %v180_v39 = vld [vmem:[%s553_s3 + $0xe0] sm:$0xff]  ;;  %v253_v41 = vld [vmem:[%s552_s1 + $0x28] sm:$0xf0] }
   0xc   :  { %126 = vmatpush.bf16.msra.mxu0 %v276_v16  ;;  %210 = vmatpush.msra.mxu3 %v181_v33  ;;  %v179_v43 = vld [vmem:[%s553_s3 + $0xd8] sm:$0xff]  ;;  %v252_v44 = vor.u32 %v302_v38, %v251_v37  ;;  %v162_v45 = vld [vmem:[%s553_s3 + $0x50] sm:$0xff]  ;;  %v256_v46 = vor.u32 %v301_v40, %v253_v41  ;;  %v161_v52 = vld [vmem:[%s553_s3 + $0x48] sm:$0xff] }
   0xd   :  { %139 = vmatpush.bf16.msra.mxu1 %v280_v17  ;;  %191 = vmatpush.msra.mxu2 %v164_v35  ;;  %v243_v47 = vld [vmem:[%s552_s1 + $0x10] sm:$0xf]  ;;  %v300_v48 = vld [vmem:[%s552_s1 + $0x14] sm:$0xf0]  ;;  %v299_v50 = vld [vmem:[%s552_s1 + $0x14] sm:$0xf] }
   0xe   :  { %211 = vmatpush.msra.mxu3 %v180_v39  ;;  %v178_v49 = vld [vmem:[%s553_s3 + $0xd0] sm:$0xff]  ;;  %v245_v51 = vld [vmem:[%s552_s1 + $0x18] sm:$0xf0]  ;;  %v177_v53 = vld [vmem:[%s553_s3 + $0xc8] sm:$0xff]  ;;  %v244_v54 = vor.u32 %v300_v48, %v243_v47 }
   0xf   :  { %192 = vmatpush.msra.mxu2 %v163_v42  ;;  %v160_v55 = vld [vmem:[%s553_s3 + $0x40] sm:$0xff]  ;;  %v248_v56 = vor.u32 %v299_v50, %v245_v51  ;;  %v298_v58 = vld [vmem:[%s552_s1 + $0x4] sm:$0xf0]  ;;  %v237_v61 = vld [vmem:[%s552_s1 + $0x8] sm:$0xf0] }
  0x10   :  { %127 = vmatpush.bf16.msra.mxu0 %v268_v22  ;;  %212 = vmatpush.msra.mxu3 %v179_v43  ;;  %v235_v57 = vld [vmem:[%s552_s1] sm:$0xf]  ;;  %v297_v60 = vld [vmem:[%s552_s1 + $0x4] sm:$0xf]  ;;  %v159_v62 = vld [vmem:[%s553_s3 + $0x38] sm:$0xff] }
  0x11   :  { %140 = vmatpush.bf16.msra.mxu1 %v272_v26  ;;  %193 = vmatpush.msra.mxu2 %v162_v45  ;;  %v176_v59 = vld [vmem:[%s553_s3 + $0xc0] sm:$0xff]  ;;  %v175_v63 = vld [vmem:[%s553_s3 + $0xb8] sm:$0xff]  ;;  %v236_v0 = vor.u32 %v298_v58, %v235_v57  ;;  %v158_v2 = vld [vmem:[%s553_s3 + $0x30] sm:$0xff]  ;;  %v240_v3 = vor.u32 %v297_v60, %v237_v61 }
  0x12   :  { %213 = vmatpush.msra.mxu3 %v178_v49  ;;  %v20_v1 = vld [vmem:[%s554_s0] sm:$0xff]  ;;  %v174_v4 = vld [vmem:[%s553_s3 + $0xb0] sm:$0xff]  ;;  %v157_v5 = vld [vmem:[%s553_s3 + $0x28] sm:$0xff] }
  0x13   :  { %194 = vmatpush.msra.mxu2 %v161_v52  ;;  %v21_v6 = vpack.c.bf16 %v20_v1, %v20_v1  ;;  %v156_v7 = vld [vmem:[%s553_s3 + $0x20] sm:$0xff]  ;;  %v173_v8 = vld [vmem:[%s553_s3 + $0xa8] sm:$0xff]  ;;  %v155_v9 = vld [vmem:[%s553_s3 + $0x18] sm:$0xff] }
  0x14   :  { %128 = vmatpush.bf16.msra.mxu0 %v260_v34  ;;  %214 = vmatpush.msra.mxu3 %v177_v53  ;;  %v172_v10 = vld [vmem:[%s553_s3 + $0xa0] sm:$0xff]  ;;  %v154_v11 = vld [vmem:[%s553_s3 + $0x10] sm:$0xff]  ;;  %v171_v12 = vld [vmem:[%s553_s3 + $0x98] sm:$0xff] }
  0x15   :  { %141 = vmatpush.bf16.msra.mxu1 %v264_v36  ;;  %195 = vmatpush.msra.mxu2 %v160_v55  ;;  %v153_v13 = vld [vmem:[%s553_s3 + $0x8] sm:$0xff]  ;;  %v170_v14 = vld [vmem:[%s553_s3 + $0x90] sm:$0xff]  ;;  %v152_v15 = vld [vmem:[%s553_s3] sm:$0xff] }
  0x16   :  { %215 = vmatpush.msra.mxu3 %v176_v59  ;;  %v169_v16 = vld [vmem:[%s553_s3 + $0x88] sm:$0xff]  ;;  %v168_v17 = vld [vmem:[%s553_s3 + $0x80] sm:$0xff] }
  0x17   :  { %196 = vmatpush.msra.mxu2 %v159_v62  ;;  %v38_v18 = vld [vmem:[%s556_s2] sm:$0x3] }
  0x18   :  { %129 = vmatpush.bf16.msra.mxu0 %v252_v44  ;;  %216 = vmatpush.msra.mxu3 %v175_v63  ;;  %v40_v19 = vperm.slane %v38_v18, 0  ;;  %v41_v20 = vperm.slane %v38_v18, 1  ;;  %v313_v29 = vld [vmem:[%s555_s4] ss:$0 sm:$0xff] }
  0x19   :  { %142 = vmatpush.bf16.msra.mxu1 %v256_v46  ;;  %197 = vmatpush.msra.mxu2 %v158_v2 }
  0x1a   :  { %217 = vmatpush.msra.mxu3 %v174_v4 }
  0x1b   :  { %198 = vmatpush.msra.mxu2 %v157_v5 }
  0x1c   :  { %130 = vmatpush.bf16.msra.mxu0 %v244_v54  ;;  %218 = vmatpush.msra.mxu3 %v173_v8 }
  0x1d   :  { %143 = vmatpush.bf16.msra.mxu1 %v248_v56  ;;  %199 = vmatpush.msra.mxu2 %v156_v7 }
  0x1e   :  { %219 = vmatpush.msra.mxu3 %v172_v10 }
  0x1f   :  { %200 = vmatpush.msra.mxu2 %v155_v9 }
  0x20   :  { %131 = vmatpush.bf16.msra.mxu0 %v236_v0  ;;  %220 = vmatpush.msra.mxu3 %v171_v12 }
  0x21   :  { %144 = vmatpush.bf16.msra.mxu1 %v240_v3  ;;  %201 = vmatpush.msra.mxu2 %v154_v11 }
  0x22   :  { %221 = vmatpush.msra.mxu3 %v170_v14 }
  0x23   :  { %132 = vmatmul.bf16.vlgmr.msra.gmra.mxu0 %v21_v6  ;;  %202 = vmatpush.msra.mxu2 %v153_v13 }
  0x24   :  { %145 = vmatmul.bf16.vlgmr.msra.gmra.mxu1 %v21_v6  ;;  %222 = vmatpush.msra.mxu3 %v169_v16 }
  0x25   :  { %203 = vmatpush.msra.mxu2 %v152_v15 }
  0x26   :  { %223 = vmatpush.msra.mxu3 %v168_v17 }
  0xa0   :  { %v133_v21 = vpop.f32.mrf.mxu0 }
  0xa1   :  { %v134_v22 = vadd.f32 %v133_v21, %v40_v19  ;;  %v146_v23 = vpop.f32.mrf.mxu1 }
  0xa2   :  { %v147_v24 = vadd.f32 %v146_v23, %v41_v20 }
  0xa3   :  { %314 = vtanh.f32 %v134_v22 }
  0xa4   :  { %316 = vtanh.f32 %v147_v24 }
  0xa8   :  { %v135_v25 = vpop.f32.mrf.mxu0 }
  0xa9   :  { %v315_v26 = vpop.eup %314  ;;  %v148_v27 = vpop.f32.mrf.mxu1 }
  0xaa   :  { %v317_v28 = vpop.eup %316  ;;  %204 = vmatmul.f32.vlgmr.msra.gmra.mxu2 %v315_v26 }
  0xab   :  { %224 = vmatmul.f32.vlgmr.msra.gmra.mxu3 %v317_v28 }
 0x12d   :  { %v205_v30 = vpop.f32.mrf.mxu2 }
 0x12e   :  { %v206_v31 = vadd.f32 %v313_v29, %v205_v30  ;;  %v225_v32 = vpop.f32.mrf.mxu3 }
 0x130   :  { %v226_v33 = vadd.f32 %v225_v32, %v206_v31 }
 0x132   :  { %228 = vst [vmem:[%s557_s5] sm:$0xff] %v226_v33 }

</bundles_post_ra>
